<compile_context>
chip_gen: v5e
topology: v5e:2x2
jax: 0.10.0
libtpu: 0.0.40
codegen_flags: <defaults>
</compile_context>

<pallas_src>
import jax
import jax.numpy as jnp
from jax import lax
from jax.experimental import pallas as pl
from jax.experimental.pallas import tpu as pltpu

KS = (39, 19, 9)          # ks=40 -> [40, 20, 10] -> force odd -> [39, 19, 9]
KMAX = KS[0]              # widest kernel: defines the im2col tap count
PAD = KMAX // 2           # 19: symmetric zero pad applied along L
BN_EPS = 1e-5


def _make_kernel(nf, cin_pad, L, Lp, Bt, nw, compute_dtype):
    """Build the kernel closure for fixed static shapes."""
    c3 = 3 * nf
    c4 = 4 * nf

    def kernel(x_ref, wbr_ref, wmp_ref, bias_ref, o_ref, slab_ref):
        # x_ref    : (cin_pad, Bt*Lp) f32; each element = [PAD zeros|L data|PAD zeros]
        # wbr_ref  : (3*nf, KMAX*cin_pad) compute_dtype (bottleneck + BN folded)
        # wmp_ref  : (nf, cin_pad) f32 (BN folded)
        # bias_ref : (4*nf, 1) f32 (folded BN bias)
        # o_ref    : (Bt, 4*nf, L) f32
        # slab_ref : (KMAX*cin_pad, nw) compute_dtype VMEM scratch (im2col)
        x = x_ref[...]                                           # (cin_pad, Bt*Lp)
        xc = x.astype(compute_dtype)

        # ---- im2col straight into VMEM scratch: slab[t*cin_pad + ci, j] = x[ci, j+t]
        for t in range(KMAX):
            slab_ref[t * cin_pad:(t + 1) * cin_pad, :] = xc[:, t:t + nw]

        # ---- all three 'same' branch convs (bottleneck folded) as ONE MXU matmul
        y_br = jnp.dot(wbr_ref[...], slab_ref[...],
                       preferred_element_type=jnp.float32)       # (3*nf, nw) f32

        # ---- MaxPool1d(3, stride=1, padding=1) on raw input, then 1x1 conv ----
        x_c = x[:, PAD:PAD + nw]
        x_l = x[:, PAD - 1:PAD - 1 + nw]
        x_r = x[:, PAD + 1:PAD + 1 + nw]
        pos = lax.broadcasted_iota(jnp.int32, (1, nw), 1)        # window-start index
        left_mask = pos == 0
        right_mask = pos == (L - 1)
        for b in range(1, Bt):
            left_mask = jnp.logical_or(left_mask, pos == b * Lp)
            right_mask = jnp.logical_or(right_mask, pos == b * Lp + (L - 1))
        neg_inf = jnp.float32(-jnp.inf)
        x_l = jnp.where(left_mask, neg_inf, x_l)                 # pool pads with -inf
        x_r = jnp.where(right_mask, neg_inf, x_r)
        pooled = jnp.maximum(jnp.maximum(x_l, x_c), x_r)         # (cin_pad, nw)
        y_mp = jnp.dot(wmp_ref[...], pooled,
                       preferred_element_type=jnp.float32)       # (nf, nw) f32

        # ---- per-element bias + ReLU, two fused stores (no 4*nf concat) ----
        b_br = bias_ref[0:c3, :]                                 # (3*nf, 1)
        b_mp = bias_ref[c3:c4, :]                                # (nf, 1)
        for b in range(Bt):
            off = b * Lp                                         # valid cols of elem b
            o_ref[b, 0:c3, :] = jnp.maximum(y_br[:, off:off + L] + b_br, 0.0)
            o_ref[b, c3:c4, :] = jnp.maximum(y_mp[:, off:off + L] + b_mp, 0.0)

    return kernel


def inception_module_forward(x, params, compute_dtype=jnp.bfloat16,
                             batch_tile=None):
    """x: (B, Cin, L) float32 in PyTorch NCL layout. Returns (B, 4*nf, L) f32."""
    B, Cin, L = x.shape
    nf = params['wb'].shape[0]
    C4 = 4 * nf
    Lp = L + 2 * PAD
    cin_pad = ((Cin + 7) // 8) * 8                               # sublane-align taps

    # Fold enough batch elements into the lane dim per grid step to approach a
    # lane-dense (~128 cols) matmul N; must divide B.
    if batch_tile is None:
        target = max(1, -(-128 // Lp))
        batch_tile = max(d for d in range(1, B + 1) if B % d == 0 and d <= target)
    Bt = batch_tile
    assert B % Bt == 0
    nw = Bt * Lp - 2 * PAD                                       # matmul N per step
    n_tiles = B // Bt

    # ---- fold eval-mode BatchNorm into the linear maps (exact; convs bias-free)
    scale = (params['gamma'] / jnp.sqrt(params['var'] + BN_EPS)).astype(jnp.float32)
    bias = (params['beta'] - params['mean'] * scale).astype(jnp.float32).reshape(C4, 1)

    # ---- fold bottleneck 1x1 into the branch conv weights (exact) and pack
    #      into one (3*nf, KMAX*cin_pad) matrix; column index = tap*cin_pad + ci
    wb = params['wb'][:, :, 0].astype(jnp.float32)               # (nf, Cin)
    # TODO(synk): if Cin > nf, keep the bottleneck matmul in-kernel instead of
    # folding (folding would grow the contraction depth).

    def branch_block(w, k, sc):
        # w: (nf, nf, k) conv weight acting on bottleneck output
        wf = jnp.einsum('ock,ci->oik', w.astype(jnp.float32), wb)   # (nf, Cin, k)
        off = PAD - k // 2                                           # center taps
        full = jnp.zeros((nf, KMAX, cin_pad), jnp.float32)
        full = full.at[:, off:off + k, :Cin].set(jnp.transpose(wf, (0, 2, 1)))
        return full.reshape(nf, KMAX * cin_pad) * sc[:, None]

    wbr = jnp.concatenate(
        [branch_block(params[f'w{i}'], KS[i], scale[i * nf:(i + 1) * nf])
         for i in range(3)], axis=0).astype(compute_dtype)       # (3nf, KMAX*cin_pad)

    wmp = (jnp.zeros((nf, cin_pad), jnp.float32)
           .at[:, :Cin].set(params['wmp'][:, :, 0].astype(jnp.float32))
           * scale[3 * nf:, None])                               # (nf, cin_pad) f32

    # ---- pack input: zero-pad L ('same' conv pad) and channels; lay Bt
    #      elements side by side along the lane axis
    x_pad = jnp.pad(x.astype(jnp.float32),
                    ((0, 0), (0, cin_pad - Cin), (PAD, PAD)))    # (B, cin_pad, Lp)
    x_packed = (x_pad.reshape(n_tiles, Bt, cin_pad, Lp)
                .transpose(0, 2, 1, 3)
                .reshape(n_tiles, cin_pad, Bt * Lp))

    kernel = _make_kernel(nf, cin_pad, L, Lp, Bt, nw, compute_dtype)

    out = pl.pallas_call(
        kernel,
        out_shape=jax.ShapeDtypeStruct((B, C4, L), jnp.float32),
        grid=(n_tiles,),
        in_specs=[
            pl.BlockSpec((None, cin_pad, Bt * Lp), lambda i: (i, 0, 0)),   # x tile
            pl.BlockSpec((3 * nf, KMAX * cin_pad), lambda i: (0, 0)),      # branch w
            pl.BlockSpec((nf, cin_pad), lambda i: (0, 0)),                 # maxpool w
            pl.BlockSpec((C4, 1), lambda i: (0, 0)),                       # BN bias
        ],
        out_specs=pl.BlockSpec((Bt, C4, L), lambda i: (i, 0, 0)),
        scratch_shapes=[pltpu.VMEM((KMAX * cin_pad, nw), compute_dtype)],
        compiler_params=pltpu.CompilerParams(
            dimension_semantics=("parallel",)),
    )(x_packed, wbr, wmp, bias)

    return out                                                    # (B, 4*nf, L)


# ---------------------------- pure-JAX reference ----------------------------
def reference_forward(x, params):
    dn = ('NCH', 'OIH', 'NCH')
    conv = lambda inp, w: lax.conv_general_dilated(
        inp, w, (1,), 'SAME', dimension_numbers=dn,
        precision=lax.Precision.HIGHEST)
    xb = conv(x, params['wb'])                                    # 1x1 bottleneck
    branches = [conv(xb, params[f'w{i}']) for i in range(3)]
    pooled = lax.reduce_window(x, -jnp.inf, lax.max, (1, 1, 3), (1, 1, 1),
                               [(0, 0), (0, 0), (1, 1)])
    branches.append(conv(pooled, params['wmp']))
    y = jnp.concatenate(branches, axis=1)                         # (B, 4nf, L)
    g = params['gamma'][None, :, None]
    b = params['beta'][None, :, None]
    m = params['mean'][None, :, None]
    v = params['var'][None, :, None]
    y = (y - m) * g / jnp.sqrt(v + BN_EPS) + b
    return jnp.maximum(y, 0.0)


if __name__ == "__main__":
    # Small shapes consistent with the module: input_dim=4, nf=8, seq=16.
    B, Cin, L, nf = 2, 4, 16, 8
    key = jax.random.PRNGKey(0)
    keys = jax.random.split(key, 10)

    def winit(k, shape, fan_in):
        bound = 1.0 / (fan_in ** 0.5)
        return jax.random.uniform(k, shape, jnp.float32, -bound, bound)

    x = jax.random.normal(keys[0], (B, Cin, L), jnp.float32)
    params = {
        'wb':  winit(keys[1], (nf, Cin, 1), Cin),                  # bottleneck 1x1
        'w0':  winit(keys[2], (nf, nf, KS[0]), nf * KS[0]),        # k=39
        'w1':  winit(keys[3], (nf, nf, KS[1]), nf * KS[1]),        # k=19
        'w2':  winit(keys[4], (nf, nf, KS[2]), nf * KS[2]),        # k=9
        'wmp': winit(keys[5], (nf, Cin, 1), Cin),                  # post-maxpool 1x1
        # BatchNorm1d(4*nf) eval-mode parameters (deterministic synthetic)
        'gamma': jax.random.uniform(keys[6], (4 * nf,), jnp.float32, 0.5, 1.5),
        'beta':  jax.random.uniform(keys[7], (4 * nf,), jnp.float32, -0.1, 0.1),
        'mean':  jax.random.uniform(keys[8], (4 * nf,), jnp.float32, -0.5, 0.5),
        'var':   jax.random.uniform(keys[9], (4 * nf,), jnp.float32, 0.5, 1.5),
    }

    ref = reference_forward(x, params)

    # Exact f32-operand path (semantics check).
    out_f32 = jax.block_until_ready(
        inception_module_forward(x, params, compute_dtype=jnp.float32))
    assert out_f32.shape == (B, 4 * nf, L), out_f32.shape
    assert jnp.allclose(out_f32, ref, rtol=1e-4, atol=1e-4), \
        float(jnp.max(jnp.abs(out_f32 - ref)))

    # Default bf16 branch-matmul path (v5e/v6e/v7x MXU peak; f32 accumulation).
    out = jax.block_until_ready(inception_module_forward(x, params))
    assert out.shape == (B, 4 * nf, L), out.shape
    assert jnp.allclose(out, ref, rtol=5e-2, atol=5e-2), \
        float(jnp.max(jnp.abs(out - ref)))

    print("KERNEL_OK")
</pallas_src>

<mosaic_0001>
module attributes {stable_mosaic.version = 11 : i64} {
  func.func @kernel(%arg0: i32, %arg1: memref<1x8x108xf32, #tpu.memory_space<vmem>>, %arg2: memref<24x312xf32, #tpu.memory_space<vmem>>, %arg3: memref<8x8xf32, #tpu.memory_space<vmem>>, %arg4: memref<32x1xf32, #tpu.memory_space<vmem>>, %arg5: memref<2x32x16xf32, #tpu.memory_space<vmem>>, %arg6: memref<312x70xf32, #tpu.memory_space<vmem>>) attributes {dimension_semantics = [#tpu.dimension_semantics<parallel>], iteration_bounds = array<i64: 1>, scalar_prefetch = 0 : i64, scratch_operands = 1 : i64, tpu.core_type = #tpu.core_type<tc>, window_params = [{transform_indices = @transform_0, window_bounds = array<i64: 1, 8, 108>}, {pipeline_mode = #tpu.pipeline_mode<synchronous>, transform_indices = @transform_1, window_bounds = array<i64: 24, 312>}, {pipeline_mode = #tpu.pipeline_mode<synchronous>, transform_indices = @transform_2, window_bounds = array<i64: 8, 8>}, {pipeline_mode = #tpu.pipeline_mode<synchronous>, transform_indices = @transform_3, window_bounds = array<i64: 32, 1>}, {transform_indices = @transform_4, window_bounds = array<i64: 2, 32, 16>}]} {
    %c0 = arith.constant 0 : index
    %c0_0 = arith.constant 0 : index
    %c0_1 = arith.constant 0 : index
    %0 = vector.load %arg1[%c0, %c0_0, %c0_1] : memref<1x8x108xf32, #tpu.memory_space<vmem>>, vector<1x8x108xf32>
    %1 = vector.shape_cast %0 : vector<1x8x108xf32> to vector<8x108xf32>
    %2 = vector.extract_strided_slice %1 {offsets = [0, 0], sizes = [8, 70], strides = [1, 1]} : vector<8x108xf32> to vector<8x70xf32>
    %c0_2 = arith.constant 0 : index
    %c0_3 = arith.constant 0 : index
    %3 = vector.load %arg6[%c0_2, %c0_3] : memref<312x70xf32, #tpu.memory_space<vmem>>, vector<8x70xf32>
    tpu.vector_store %arg6[%c0_2, %c0_3], %2 {strides = array<i32>} : memref<312x70xf32, #tpu.memory_space<vmem>>, vector<8x70xf32>,
    %4 = vector.extract_strided_slice %1 {offsets = [0, 1], sizes = [8, 70], strides = [1, 1]} : vector<8x108xf32> to vector<8x70xf32>
    %c8 = arith.constant 8 : index
    %c0_4 = arith.constant 0 : index
    %5 = vector.load %arg6[%c8, %c0_4] : memref<312x70xf32, #tpu.memory_space<vmem>>, vector<8x70xf32>
    tpu.vector_store %arg6[%c8, %c0_4], %4 {strides = array<i32>} : memref<312x70xf32, #tpu.memory_space<vmem>>, vector<8x70xf32>,
    %6 = vector.extract_strided_slice %1 {offsets = [0, 2], sizes = [8, 70], strides = [1, 1]} : vector<8x108xf32> to vector<8x70xf32>
    %c16 = arith.constant 16 : index
    %c0_5 = arith.constant 0 : index
    %7 = vector.load %arg6[%c16, %c0_5] : memref<312x70xf32, #tpu.memory_space<vmem>>, vector<8x70xf32>
    tpu.vector_store %arg6[%c16, %c0_5], %6 {strides = array<i32>} : memref<312x70xf32, #tpu.memory_space<vmem>>, vector<8x70xf32>,
    %8 = vector.extract_strided_slice %1 {offsets = [0, 3], sizes = [8, 70], strides = [1, 1]} : vector<8x108xf32> to vector<8x70xf32>
    %c24 = arith.constant 24 : index
    %c0_6 = arith.constant 0 : index
    %9 = vector.load %arg6[%c24, %c0_6] : memref<312x70xf32, #tpu.memory_space<vmem>>, vector<8x70xf32>
    tpu.vector_store %arg6[%c24, %c0_6], %8 {strides = array<i32>} : memref<312x70xf32, #tpu.memory_space<vmem>>, vector<8x70xf32>,
    %10 = vector.extract_strided_slice %1 {offsets = [0, 4], sizes = [8, 70], strides = [1, 1]} : vector<8x108xf32> to vector<8x70xf32>
    %c32 = arith.constant 32 : index
    %c0_7 = arith.constant 0 : index
    %11 = vector.load %arg6[%c32, %c0_7] : memref<312x70xf32, #tpu.memory_space<vmem>>, vector<8x70xf32>
    tpu.vector_store %arg6[%c32, %c0_7], %10 {strides = array<i32>} : memref<312x70xf32, #tpu.memory_space<vmem>>, vector<8x70xf32>,
    %12 = vector.extract_strided_slice %1 {offsets = [0, 5], sizes = [8, 70], strides = [1, 1]} : vector<8x108xf32> to vector<8x70xf32>
    %c40 = arith.constant 40 : index
    %c0_8 = arith.constant 0 : index
    %13 = vector.load %arg6[%c40, %c0_8] : memref<312x70xf32, #tpu.memory_space<vmem>>, vector<8x70xf32>
    tpu.vector_store %arg6[%c40, %c0_8], %12 {strides = array<i32>} : memref<312x70xf32, #tpu.memory_space<vmem>>, vector<8x70xf32>,
    %14 = vector.extract_strided_slice %1 {offsets = [0, 6], sizes = [8, 70], strides = [1, 1]} : vector<8x108xf32> to vector<8x70xf32>
    %c48 = arith.constant 48 : index
    %c0_9 = arith.constant 0 : index
    %15 = vector.load %arg6[%c48, %c0_9] : memref<312x70xf32, #tpu.memory_space<vmem>>, vector<8x70xf32>
    tpu.vector_store %arg6[%c48, %c0_9], %14 {strides = array<i32>} : memref<312x70xf32, #tpu.memory_space<vmem>>, vector<8x70xf32>,
    %16 = vector.extract_strided_slice %1 {offsets = [0, 7], sizes = [8, 70], strides = [1, 1]} : vector<8x108xf32> to vector<8x70xf32>
    %c56 = arith.constant 56 : index
    %c0_10 = arith.constant 0 : index
    %17 = vector.load %arg6[%c56, %c0_10] : memref<312x70xf32, #tpu.memory_space<vmem>>, vector<8x70xf32>
    tpu.vector_store %arg6[%c56, %c0_10], %16 {strides = array<i32>} : memref<312x70xf32, #tpu.memory_space<vmem>>, vector<8x70xf32>,
    %18 = vector.extract_strided_slice %1 {offsets = [0, 8], sizes = [8, 70], strides = [1, 1]} : vector<8x108xf32> to vector<8x70xf32>
    %c64 = arith.constant 64 : index
    %c0_11 = arith.constant 0 : index
    %19 = vector.load %arg6[%c64, %c0_11] : memref<312x70xf32, #tpu.memory_space<vmem>>, vector<8x70xf32>
    tpu.vector_store %arg6[%c64, %c0_11], %18 {strides = array<i32>} : memref<312x70xf32, #tpu.memory_space<vmem>>, vector<8x70xf32>,
    %20 = vector.extract_strided_slice %1 {offsets = [0, 9], sizes = [8, 70], strides = [1, 1]} : vector<8x108xf32> to vector<8x70xf32>
    %c72 = arith.constant 72 : index
    %c0_12 = arith.constant 0 : index
    %21 = vector.load %arg6[%c72, %c0_12] : memref<312x70xf32, #tpu.memory_space<vmem>>, vector<8x70xf32>
    tpu.vector_store %arg6[%c72, %c0_12], %20 {strides = array<i32>} : memref<312x70xf32, #tpu.memory_space<vmem>>, vector<8x70xf32>,
    %22 = vector.extract_strided_slice %1 {offsets = [0, 10], sizes = [8, 70], strides = [1, 1]} : vector<8x108xf32> to vector<8x70xf32>
    %c80 = arith.constant 80 : index
    %c0_13 = arith.constant 0 : index
    %23 = vector.load %arg6[%c80, %c0_13] : memref<312x70xf32, #tpu.memory_space<vmem>>, vector<8x70xf32>
    tpu.vector_store %arg6[%c80, %c0_13], %22 {strides = array<i32>} : memref<312x70xf32, #tpu.memory_space<vmem>>, vector<8x70xf32>,
    %24 = vector.extract_strided_slice %1 {offsets = [0, 11], sizes = [8, 70], strides = [1, 1]} : vector<8x108xf32> to vector<8x70xf32>
    %c88 = arith.constant 88 : index
    %c0_14 = arith.constant 0 : index
    %25 = vector.load %arg6[%c88, %c0_14] : memref<312x70xf32, #tpu.memory_space<vmem>>, vector<8x70xf32>
    tpu.vector_store %arg6[%c88, %c0_14], %24 {strides = array<i32>} : memref<312x70xf32, #tpu.memory_space<vmem>>, vector<8x70xf32>,
    %26 = vector.extract_strided_slice %1 {offsets = [0, 12], sizes = [8, 70], strides = [1, 1]} : vector<8x108xf32> to vector<8x70xf32>
    %c96 = arith.constant 96 : index
    %c0_15 = arith.constant 0 : index
    %27 = vector.load %arg6[%c96, %c0_15] : memref<312x70xf32, #tpu.memory_space<vmem>>, vector<8x70xf32>
    tpu.vector_store %arg6[%c96, %c0_15], %26 {strides = array<i32>} : memref<312x70xf32, #tpu.memory_space<vmem>>, vector<8x70xf32>,
    %28 = vector.extract_strided_slice %1 {offsets = [0, 13], sizes = [8, 70], strides = [1, 1]} : vector<8x108xf32> to vector<8x70xf32>
    %c104 = arith.constant 104 : index
    %c0_16 = arith.constant 0 : index
    %29 = vector.load %arg6[%c104, %c0_16] : memref<312x70xf32, #tpu.memory_space<vmem>>, vector<8x70xf32>
    tpu.vector_store %arg6[%c104, %c0_16], %28 {strides = array<i32>} : memref<312x70xf32, #tpu.memory_space<vmem>>, vector<8x70xf32>,
    %30 = vector.extract_strided_slice %1 {offsets = [0, 14], sizes = [8, 70], strides = [1, 1]} : vector<8x108xf32> to vector<8x70xf32>
    %c112 = arith.constant 112 : index
    %c0_17 = arith.constant 0 : index
    %31 = vector.load %arg6[%c112, %c0_17] : memref<312x70xf32, #tpu.memory_space<vmem>>, vector<8x70xf32>
    tpu.vector_store %arg6[%c112, %c0_17], %30 {strides = array<i32>} : memref<312x70xf32, #tpu.memory_space<vmem>>, vector<8x70xf32>,
    %32 = vector.extract_strided_slice %1 {offsets = [0, 15], sizes = [8, 70], strides = [1, 1]} : vector<8x108xf32> to vector<8x70xf32>
    %c120 = arith.constant 120 : index
    %c0_18 = arith.constant 0 : index
    %33 = vector.load %arg6[%c120, %c0_18] : memref<312x70xf32, #tpu.memory_space<vmem>>, vector<8x70xf32>
    tpu.vector_store %arg6[%c120, %c0_18], %32 {strides = array<i32>} : memref<312x70xf32, #tpu.memory_space<vmem>>, vector<8x70xf32>,
    %34 = vector.extract_strided_slice %1 {offsets = [0, 16], sizes = [8, 70], strides = [1, 1]} : vector<8x108xf32> to vector<8x70xf32>
    %c128 = arith.constant 128 : index
    %c0_19 = arith.constant 0 : index
    %35 = vector.load %arg6[%c128, %c0_19] : memref<312x70xf32, #tpu.memory_space<vmem>>, vector<8x70xf32>
    tpu.vector_store %arg6[%c128, %c0_19], %34 {strides = array<i32>} : memref<312x70xf32, #tpu.memory_space<vmem>>, vector<8x70xf32>,
    %36 = vector.extract_strided_slice %1 {offsets = [0, 17], sizes = [8, 70], strides = [1, 1]} : vector<8x108xf32> to vector<8x70xf32>
    %c136 = arith.constant 136 : index
    %c0_20 = arith.constant 0 : index
    %37 = vector.load %arg6[%c136, %c0_20] : memref<312x70xf32, #tpu.memory_space<vmem>>, vector<8x70xf32>
    tpu.vector_store %arg6[%c136, %c0_20], %36 {strides = array<i32>} : memref<312x70xf32, #tpu.memory_space<vmem>>, vector<8x70xf32>,
    %38 = vector.extract_strided_slice %1 {offsets = [0, 18], sizes = [8, 70], strides = [1, 1]} : vector<8x108xf32> to vector<8x70xf32>
    %c144 = arith.constant 144 : index
    %c0_21 = arith.constant 0 : index
    %39 = vector.load %arg6[%c144, %c0_21] : memref<312x70xf32, #tpu.memory_space<vmem>>, vector<8x70xf32>
    tpu.vector_store %arg6[%c144, %c0_21], %38 {strides = array<i32>} : memref<312x70xf32, #tpu.memory_space<vmem>>, vector<8x70xf32>,
    %40 = vector.extract_strided_slice %1 {offsets = [0, 19], sizes = [8, 70], strides = [1, 1]} : vector<8x108xf32> to vector<8x70xf32>
    %c152 = arith.constant 152 : index
    %c0_22 = arith.constant 0 : index
    %41 = vector.load %arg6[%c152, %c0_22] : memref<312x70xf32, #tpu.memory_space<vmem>>, vector<8x70xf32>
    tpu.vector_store %arg6[%c152, %c0_22], %40 {strides = array<i32>} : memref<312x70xf32, #tpu.memory_space<vmem>>, vector<8x70xf32>,
    %42 = vector.extract_strided_slice %1 {offsets = [0, 20], sizes = [8, 70], strides = [1, 1]} : vector<8x108xf32> to vector<8x70xf32>
    %c160 = arith.constant 160 : index
    %c0_23 = arith.constant 0 : index
    %43 = vector.load %arg6[%c160, %c0_23] : memref<312x70xf32, #tpu.memory_space<vmem>>, vector<8x70xf32>
    tpu.vector_store %arg6[%c160, %c0_23], %42 {strides = array<i32>} : memref<312x70xf32, #tpu.memory_space<vmem>>, vector<8x70xf32>,
    %44 = vector.extract_strided_slice %1 {offsets = [0, 21], sizes = [8, 70], strides = [1, 1]} : vector<8x108xf32> to vector<8x70xf32>
    %c168 = arith.constant 168 : index
    %c0_24 = arith.constant 0 : index
    %45 = vector.load %arg6[%c168, %c0_24] : memref<312x70xf32, #tpu.memory_space<vmem>>, vector<8x70xf32>
    tpu.vector_store %arg6[%c168, %c0_24], %44 {strides = array<i32>} : memref<312x70xf32, #tpu.memory_space<vmem>>, vector<8x70xf32>,
    %46 = vector.extract_strided_slice %1 {offsets = [0, 22], sizes = [8, 70], strides = [1, 1]} : vector<8x108xf32> to vector<8x70xf32>
    %c176 = arith.constant 176 : index
    %c0_25 = arith.constant 0 : index
    %47 = vector.load %arg6[%c176, %c0_25] : memref<312x70xf32, #tpu.memory_space<vmem>>, vector<8x70xf32>
    tpu.vector_store %arg6[%c176, %c0_25], %46 {strides = array<i32>} : memref<312x70xf32, #tpu.memory_space<vmem>>, vector<8x70xf32>,
    %48 = vector.extract_strided_slice %1 {offsets = [0, 23], sizes = [8, 70], strides = [1, 1]} : vector<8x108xf32> to vector<8x70xf32>
    %c184 = arith.constant 184 : index
    %c0_26 = arith.constant 0 : index
    %49 = vector.load %arg6[%c184, %c0_26] : memref<312x70xf32, #tpu.memory_space<vmem>>, vector<8x70xf32>
    tpu.vector_store %arg6[%c184, %c0_26], %48 {strides = array<i32>} : memref<312x70xf32, #tpu.memory_space<vmem>>, vector<8x70xf32>,
    %50 = vector.extract_strided_slice %1 {offsets = [0, 24], sizes = [8, 70], strides = [1, 1]} : vector<8x108xf32> to vector<8x70xf32>
    %c192 = arith.constant 192 : index
    %c0_27 = arith.constant 0 : index
    %51 = vector.load %arg6[%c192, %c0_27] : memref<312x70xf32, #tpu.memory_space<vmem>>, vector<8x70xf32>
    tpu.vector_store %arg6[%c192, %c0_27], %50 {strides = array<i32>} : memref<312x70xf32, #tpu.memory_space<vmem>>, vector<8x70xf32>,
    %52 = vector.extract_strided_slice %1 {offsets = [0, 25], sizes = [8, 70], strides = [1, 1]} : vector<8x108xf32> to vector<8x70xf32>
    %c200 = arith.constant 200 : index
    %c0_28 = arith.constant 0 : index
    %53 = vector.load %arg6[%c200, %c0_28] : memref<312x70xf32, #tpu.memory_space<vmem>>, vector<8x70xf32>
    tpu.vector_store %arg6[%c200, %c0_28], %52 {strides = array<i32>} : memref<312x70xf32, #tpu.memory_space<vmem>>, vector<8x70xf32>,
    %54 = vector.extract_strided_slice %1 {offsets = [0, 26], sizes = [8, 70], strides = [1, 1]} : vector<8x108xf32> to vector<8x70xf32>
    %c208 = arith.constant 208 : index
    %c0_29 = arith.constant 0 : index
    %55 = vector.load %arg6[%c208, %c0_29] : memref<312x70xf32, #tpu.memory_space<vmem>>, vector<8x70xf32>
    tpu.vector_store %arg6[%c208, %c0_29], %54 {strides = array<i32>} : memref<312x70xf32, #tpu.memory_space<vmem>>, vector<8x70xf32>,
    %56 = vector.extract_strided_slice %1 {offsets = [0, 27], sizes = [8, 70], strides = [1, 1]} : vector<8x108xf32> to vector<8x70xf32>
    %c216 = arith.constant 216 : index
    %c0_30 = arith.constant 0 : index
    %57 = vector.load %arg6[%c216, %c0_30] : memref<312x70xf32, #tpu.memory_space<vmem>>, vector<8x70xf32>
    tpu.vector_store %arg6[%c216, %c0_30], %56 {strides = array<i32>} : memref<312x70xf32, #tpu.memory_space<vmem>>, vector<8x70xf32>,
    %58 = vector.extract_strided_slice %1 {offsets = [0, 28], sizes = [8, 70], strides = [1, 1]} : vector<8x108xf32> to vector<8x70xf32>
    %c224 = arith.constant 224 : index
    %c0_31 = arith.constant 0 : index
    %59 = vector.load %arg6[%c224, %c0_31] : memref<312x70xf32, #tpu.memory_space<vmem>>, vector<8x70xf32>
    tpu.vector_store %arg6[%c224, %c0_31], %58 {strides = array<i32>} : memref<312x70xf32, #tpu.memory_space<vmem>>, vector<8x70xf32>,
    %60 = vector.extract_strided_slice %1 {offsets = [0, 29], sizes = [8, 70], strides = [1, 1]} : vector<8x108xf32> to vector<8x70xf32>
    %c232 = arith.constant 232 : index
    %c0_32 = arith.constant 0 : index
    %61 = vector.load %arg6[%c232, %c0_32] : memref<312x70xf32, #tpu.memory_space<vmem>>, vector<8x70xf32>
    tpu.vector_store %arg6[%c232, %c0_32], %60 {strides = array<i32>} : memref<312x70xf32, #tpu.memory_space<vmem>>, vector<8x70xf32>,
    %62 = vector.extract_strided_slice %1 {offsets = [0, 30], sizes = [8, 70], strides = [1, 1]} : vector<8x108xf32> to vector<8x70xf32>
    %c240 = arith.constant 240 : index
    %c0_33 = arith.constant 0 : index
    %63 = vector.load %arg6[%c240, %c0_33] : memref<312x70xf32, #tpu.memory_space<vmem>>, vector<8x70xf32>
    tpu.vector_store %arg6[%c240, %c0_33], %62 {strides = array<i32>} : memref<312x70xf32, #tpu.memory_space<vmem>>, vector<8x70xf32>,
    %64 = vector.extract_strided_slice %1 {offsets = [0, 31], sizes = [8, 70], strides = [1, 1]} : vector<8x108xf32> to vector<8x70xf32>
    %c248 = arith.constant 248 : index
    %c0_34 = arith.constant 0 : index
    %65 = vector.load %arg6[%c248, %c0_34] : memref<312x70xf32, #tpu.memory_space<vmem>>, vector<8x70xf32>
    tpu.vector_store %arg6[%c248, %c0_34], %64 {strides = array<i32>} : memref<312x70xf32, #tpu.memory_space<vmem>>, vector<8x70xf32>,
    %66 = vector.extract_strided_slice %1 {offsets = [0, 32], sizes = [8, 70], strides = [1, 1]} : vector<8x108xf32> to vector<8x70xf32>
    %c256 = arith.constant 256 : index
    %c0_35 = arith.constant 0 : index
    %67 = vector.load %arg6[%c256, %c0_35] : memref<312x70xf32, #tpu.memory_space<vmem>>, vector<8x70xf32>
    tpu.vector_store %arg6[%c256, %c0_35], %66 {strides = array<i32>} : memref<312x70xf32, #tpu.memory_space<vmem>>, vector<8x70xf32>,
    %68 = vector.extract_strided_slice %1 {offsets = [0, 33], sizes = [8, 70], strides = [1, 1]} : vector<8x108xf32> to vector<8x70xf32>
    %c264 = arith.constant 264 : index
    %c0_36 = arith.constant 0 : index
    %69 = vector.load %arg6[%c264, %c0_36] : memref<312x70xf32, #tpu.memory_space<vmem>>, vector<8x70xf32>
    tpu.vector_store %arg6[%c264, %c0_36], %68 {strides = array<i32>} : memref<312x70xf32, #tpu.memory_space<vmem>>, vector<8x70xf32>,
    %70 = vector.extract_strided_slice %1 {offsets = [0, 34], sizes = [8, 70], strides = [1, 1]} : vector<8x108xf32> to vector<8x70xf32>
    %c272 = arith.constant 272 : index
    %c0_37 = arith.constant 0 : index
    %71 = vector.load %arg6[%c272, %c0_37] : memref<312x70xf32, #tpu.memory_space<vmem>>, vector<8x70xf32>
    tpu.vector_store %arg6[%c272, %c0_37], %70 {strides = array<i32>} : memref<312x70xf32, #tpu.memory_space<vmem>>, vector<8x70xf32>,
    %72 = vector.extract_strided_slice %1 {offsets = [0, 35], sizes = [8, 70], strides = [1, 1]} : vector<8x108xf32> to vector<8x70xf32>
    %c280 = arith.constant 280 : index
    %c0_38 = arith.constant 0 : index
    %73 = vector.load %arg6[%c280, %c0_38] : memref<312x70xf32, #tpu.memory_space<vmem>>, vector<8x70xf32>
    tpu.vector_store %arg6[%c280, %c0_38], %72 {strides = array<i32>} : memref<312x70xf32, #tpu.memory_space<vmem>>, vector<8x70xf32>,
    %74 = vector.extract_strided_slice %1 {offsets = [0, 36], sizes = [8, 70], strides = [1, 1]} : vector<8x108xf32> to vector<8x70xf32>
    %c288 = arith.constant 288 : index
    %c0_39 = arith.constant 0 : index
    %75 = vector.load %arg6[%c288, %c0_39] : memref<312x70xf32, #tpu.memory_space<vmem>>, vector<8x70xf32>
    tpu.vector_store %arg6[%c288, %c0_39], %74 {strides = array<i32>} : memref<312x70xf32, #tpu.memory_space<vmem>>, vector<8x70xf32>,
    %76 = vector.extract_strided_slice %1 {offsets = [0, 37], sizes = [8, 70], strides = [1, 1]} : vector<8x108xf32> to vector<8x70xf32>
    %c296 = arith.constant 296 : index
    %c0_40 = arith.constant 0 : index
    %77 = vector.load %arg6[%c296, %c0_40] : memref<312x70xf32, #tpu.memory_space<vmem>>, vector<8x70xf32>
    tpu.vector_store %arg6[%c296, %c0_40], %76 {strides = array<i32>} : memref<312x70xf32, #tpu.memory_space<vmem>>, vector<8x70xf32>,
    %78 = vector.extract_strided_slice %1 {offsets = [0, 38], sizes = [8, 70], strides = [1, 1]} : vector<8x108xf32> to vector<8x70xf32>
    %c304 = arith.constant 304 : index
    %c0_41 = arith.constant 0 : index
    %79 = vector.load %arg6[%c304, %c0_41] : memref<312x70xf32, #tpu.memory_space<vmem>>, vector<8x70xf32>
    tpu.vector_store %arg6[%c304, %c0_41], %78 {strides = array<i32>} : memref<312x70xf32, #tpu.memory_space<vmem>>, vector<8x70xf32>,
    %c0_42 = arith.constant 0 : index
    %c0_43 = arith.constant 0 : index
    %80 = vector.load %arg2[%c0_42, %c0_43] : memref<24x312xf32, #tpu.memory_space<vmem>>, vector<24x312xf32>
    %c0_44 = arith.constant 0 : index
    %c0_45 = arith.constant 0 : index
    %81 = vector.load %arg6[%c0_44, %c0_45] : memref<312x70xf32, #tpu.memory_space<vmem>>, vector<312x70xf32>
    %cst = arith.constant dense<0.000000e+00> : vector<24x70xf32>
    %82 = tpu.matmul %80, %81, %cst {dimension_numbers = #tpu.dot_dimension_numbers<[1], [0], [0], [1], [0, 0, 1, 1], [], []>} : vector<24x312xf32>, vector<312x70xf32>, vector<24x70xf32> -> vector<24x70xf32>
    %83 = vector.extract_strided_slice %1 {offsets = [0, 19], sizes = [8, 70], strides = [1, 1]} : vector<8x108xf32> to vector<8x70xf32>
    %84 = vector.extract_strided_slice %1 {offsets = [0, 18], sizes = [8, 70], strides = [1, 1]} : vector<8x108xf32> to vector<8x70xf32>
    %85 = vector.extract_strided_slice %1 {offsets = [0, 20], sizes = [8, 70], strides = [1, 1]} : vector<8x108xf32> to vector<8x70xf32>
    %86 = tpu.iota {dimensions = array<i32: 1>} : vector<1x70xi32>
    %c0_i32 = arith.constant 0 : i32
    %87 = vector.broadcast %c0_i32 : i32 to vector<1x70xi32>
    %88 = arith.cmpi eq, %86, %87 : vector<1x70xi32>
    %c15_i32 = arith.constant 15 : i32
    %89 = vector.broadcast %c15_i32 : i32 to vector<1x70xi32>
    %90 = arith.cmpi eq, %86, %89 : vector<1x70xi32>
    %c54_i32 = arith.constant 54 : i32
    %91 = vector.broadcast %c54_i32 : i32 to vector<1x70xi32>
    %92 = arith.cmpi eq, %86, %91 : vector<1x70xi32>
    %93 = arith.ori %88, %92 : vector<1x70xi1>
    %c69_i32 = arith.constant 69 : i32
    %94 = vector.broadcast %c69_i32 : i32 to vector<1x70xi32>
    %95 = arith.cmpi eq, %86, %94 : vector<1x70xi32>
    %96 = arith.ori %90, %95 : vector<1x70xi1>
    %cst_46 = arith.constant 0xFF800000 : f32
    %97 = vector.shape_cast %93 : vector<1x70xi1> to vector<1x70xi1>
    %98 = vector.broadcast %97 : vector<1x70xi1> to vector<8x70xi1>
    %99 = vector.broadcast %cst_46 : f32 to vector<8x70xf32>
    %100 = arith.select %98, %99, %84 : vector<8x70xi1>, vector<8x70xf32>
    %cst_47 = arith.constant 0xFF800000 : f32
    %101 = vector.shape_cast %96 : vector<1x70xi1> to vector<1x70xi1>
    %102 = vector.broadcast %101 : vector<1x70xi1> to vector<8x70xi1>
    %103 = vector.broadcast %cst_47 : f32 to vector<8x70xf32>
    %104 = arith.select %102, %103, %85 : vector<8x70xi1>, vector<8x70xf32>
    %105 = arith.maximumf %100, %83 : vector<8x70xf32>
    %106 = arith.maximumf %105, %104 : vector<8x70xf32>
    %c0_48 = arith.constant 0 : index
    %c0_49 = arith.constant 0 : index
    %107 = vector.load %arg3[%c0_48, %c0_49] : memref<8x8xf32, #tpu.memory_space<vmem>>, vector<8x8xf32>
    %cst_50 = arith.constant dense<0.000000e+00> : vector<8x70xf32>
    %108 = tpu.matmul %107, %106, %cst_50 {dimension_numbers = #tpu.dot_dimension_numbers<[1], [0], [0], [1], [0, 0, 1, 1], [], []>} : vector<8x8xf32>, vector<8x70xf32>, vector<8x70xf32> -> vector<8x70xf32>
    %c0_51 = arith.constant 0 : index
    %c0_52 = arith.constant 0 : index
    %109 = vector.load %arg4[%c0_51, %c0_52] : memref<32x1xf32, #tpu.memory_space<vmem>>, vector<24x1xf32>
    %c24_53 = arith.constant 24 : index
    %c0_54 = arith.constant 0 : index
    %110 = vector.load %arg4[%c24_53, %c0_54] : memref<32x1xf32, #tpu.memory_space<vmem>>, vector<8x1xf32>
    %111 = vector.extract_strided_slice %82 {offsets = [0, 0], sizes = [24, 16], strides = [1, 1]} : vector<24x70xf32> to vector<24x16xf32>
    %112 = vector.broadcast %109 : vector<24x1xf32> to vector<24x16xf32>
    %113 = arith.addf %111, %112 : vector<24x16xf32>
    %cst_55 = arith.constant 0.000000e+00 : f32
    %114 = vector.broadcast %cst_55 : f32 to vector<24x16xf32>
    %115 = arith.maximumf %113, %114 : vector<24x16xf32>
    %c0_56 = arith.constant 0 : index
    %c0_57 = arith.constant 0 : index
    %c0_58 = arith.constant 0 : index
    %116 = vector.load %arg5[%c0_56, %c0_57, %c0_58] : memref<2x32x16xf32, #tpu.memory_space<vmem>>, vector<1x24x16xf32>
    %117 = vector.shape_cast %116 : vector<1x24x16xf32> to vector<24x16xf32>
    %118 = vector.shape_cast %115 : vector<24x16xf32> to vector<1x24x16xf32>
    tpu.vector_store %arg5[%c0_56, %c0_57, %c0_58], %118 {strides = array<i32>} : memref<2x32x16xf32, #tpu.memory_space<vmem>>, vector<1x24x16xf32>,
    %119 = vector.extract_strided_slice %108 {offsets = [0, 0], sizes = [8, 16], strides = [1, 1]} : vector<8x70xf32> to vector<8x16xf32>
    %120 = vector.broadcast %110 : vector<8x1xf32> to vector<8x16xf32>
    %121 = arith.addf %119, %120 : vector<8x16xf32>
    %cst_59 = arith.constant 0.000000e+00 : f32
    %122 = vector.broadcast %cst_59 : f32 to vector<8x16xf32>
    %123 = arith.maximumf %121, %122 : vector<8x16xf32>
    %c0_60 = arith.constant 0 : index
    %c24_61 = arith.constant 24 : index
    %c0_62 = arith.constant 0 : index
    %124 = vector.load %arg5[%c0_60, %c24_61, %c0_62] : memref<2x32x16xf32, #tpu.memory_space<vmem>>, vector<1x8x16xf32>
    %125 = vector.shape_cast %124 : vector<1x8x16xf32> to vector<8x16xf32>
    %126 = vector.shape_cast %123 : vector<8x16xf32> to vector<1x8x16xf32>
    tpu.vector_store %arg5[%c0_60, %c24_61, %c0_62], %126 {strides = array<i32>} : memref<2x32x16xf32, #tpu.memory_space<vmem>>, vector<1x8x16xf32>,
    %127 = vector.extract_strided_slice %82 {offsets = [0, 54], sizes = [24, 16], strides = [1, 1]} : vector<24x70xf32> to vector<24x16xf32>
    %128 = vector.broadcast %109 : vector<24x1xf32> to vector<24x16xf32>
    %129 = arith.addf %127, %128 : vector<24x16xf32>
    %cst_63 = arith.constant 0.000000e+00 : f32
    %130 = vector.broadcast %cst_63 : f32 to vector<24x16xf32>
    %131 = arith.maximumf %129, %130 : vector<24x16xf32>
    %c1 = arith.constant 1 : index
    %c0_64 = arith.constant 0 : index
    %c0_65 = arith.constant 0 : index
    %132 = vector.load %arg5[%c1, %c0_64, %c0_65] : memref<2x32x16xf32, #tpu.memory_space<vmem>>, vector<1x24x16xf32>
    %133 = vector.shape_cast %132 : vector<1x24x16xf32> to vector<24x16xf32>
    %134 = vector.shape_cast %131 : vector<24x16xf32> to vector<1x24x16xf32>
    tpu.vector_store %arg5[%c1, %c0_64, %c0_65], %134 {strides = array<i32>} : memref<2x32x16xf32, #tpu.memory_space<vmem>>, vector<1x24x16xf32>,
    %135 = vector.extract_strided_slice %108 {offsets = [0, 54], sizes = [8, 16], strides = [1, 1]} : vector<8x70xf32> to vector<8x16xf32>
    %136 = vector.broadcast %110 : vector<8x1xf32> to vector<8x16xf32>
    %137 = arith.addf %135, %136 : vector<8x16xf32>
    %cst_66 = arith.constant 0.000000e+00 : f32
    %138 = vector.broadcast %cst_66 : f32 to vector<8x16xf32>
    %139 = arith.maximumf %137, %138 : vector<8x16xf32>
    %c1_67 = arith.constant 1 : index
    %c24_68 = arith.constant 24 : index
    %c0_69 = arith.constant 0 : index
    %140 = vector.load %arg5[%c1_67, %c24_68, %c0_69] : memref<2x32x16xf32, #tpu.memory_space<vmem>>, vector<1x8x16xf32>
    %141 = vector.shape_cast %140 : vector<1x8x16xf32> to vector<8x16xf32>
    %142 = vector.shape_cast %139 : vector<8x16xf32> to vector<1x8x16xf32>
    tpu.vector_store %arg5[%c1_67, %c24_68, %c0_69], %142 {strides = array<i32>} : memref<2x32x16xf32, #tpu.memory_space<vmem>>, vector<1x8x16xf32>,
    return
  }
  func.func @transform_0(%arg0: i32) -> (i32, i32, i32) {
    %c0_i32 = arith.constant 0 : i32
    %c0_i32_0 = arith.constant 0 : i32
    %c0_i32_1 = arith.constant 0 : i32
    return %arg0, %c0_i32, %c0_i32_0 : i32, i32, i32
  }
  func.func @transform_1(%arg0: i32) -> (i32, i32) {
    %c0_i32 = arith.constant 0 : i32
    %c0_i32_0 = arith.constant 0 : i32
    %c0_i32_1 = arith.constant 0 : i32
    return %c0_i32, %c0_i32_0 : i32, i32
  }
  func.func @transform_2(%arg0: i32) -> (i32, i32) {
    %c0_i32 = arith.constant 0 : i32
    %c0_i32_0 = arith.constant 0 : i32
    %c0_i32_1 = arith.constant 0 : i32
    return %c0_i32, %c0_i32_0 : i32, i32
  }
  func.func @transform_3(%arg0: i32) -> (i32, i32) {
    %c0_i32 = arith.constant 0 : i32
    %c0_i32_0 = arith.constant 0 : i32
    %c0_i32_1 = arith.constant 0 : i32
    return %c0_i32, %c0_i32_0 : i32, i32
  }
  func.func @transform_4(%arg0: i32) -> (i32, i32, i32) {
    %c0_i32 = arith.constant 0 : i32
    %c0_i32_0 = arith.constant 0 : i32
    %c0_i32_1 = arith.constant 0 : i32
    return %arg0, %c0_i32, %c0_i32_0 : i32, i32, i32
  }
}

</mosaic_0001>

<bundles_post_ra>
// kernel: tpu_custom_call.1
= control target key start
LH: loop header
LB: loop body
LE: loop exit
PB: predicated region body
PF: predicated region fallthrough
CT: control target
= control target key end

     0   :  { %9 = vsyncpa [#allocation4], 0  ;;  %s525_s18 = smov [#allocation3]   ;;  %s526_s20 = smov 384   ;;  %s744_s0 = inlined_call_operand.vmem [shape: f32[1,8,108], index: 0, kind: input, shape index: {}]   ;;  %s745_s1 = inlined_call_operand.hbm [shape: f32[24,312], index: 1, kind: input, shape index: {}]   ;;  %s746_s2 = inlined_call_operand.vmem [shape: f32[8,8], index: 2, kind: input, shape index: {}]   ;;  %s747_s3 = inlined_call_operand.vmem [shape: f32[32,1], index: 3, kind: input, shape index: {}]   ;;  %s748_s4 = inlined_call_operand.vmem [shape: f32[2,32,16], index: 4, kind: output, shape index: {}]  }
   0x1   :  { %s16_s17 = sshll.u32 %s745_s1, 4  ;;  %s18_s19 = sshll.u32 %s525_s18, 4  ;;  %s17_s17 = int_to_ptr.hbm [resolvable:$true] %s16_s17  ;;  %s19_s19 = int_to_ptr.vmem [resolvable:$true] %s18_s19 }
   0x2   :  { %s527_s21 = smov 24  }
   0x3   :  { %24 = dma.hbm_to_vmem [thread:$0]  %s17_s17, 1152, %s19_s19, [#allocation4], %s526_s20, %s526_s20, %s527_s21  }
   0x4   :  { %523 = dma.done.wait [#allocation4], 1152  }
   0x5   :  { %524 = vsyncadd [#allocation4], 4294966144  ;;  %v599_v0 = vld [vmem:[%s744_s0] sm:$0xff]  ;;  %s528_s24 = smov 97   ;;  %s529_s25 = smov 99   ;;  %vm34_vm0 = vcmask 572416  }
   0x6   :  { %157 = vrot.lane.b32.xlu0 %v599_v0, %s528_s24  ;;  %149 = vrot.lane.b32.xlu1 %v599_v0, %s529_s25  ;;  %s530_s1 = smov 100   ;;  %s531_s26 = smov 98   ;;  %35 = vst.msk [vmem:[#allocation2] sm:$0xff] %vm34_vm0, %v599_v0  ;;  %vm237_vm1 = vcmask 457728   ;;  %vm342_vm8 = vcmask 64512   ;;  %vm391_vm9 = vcmask 130048  }
   0x7   :  { %145 = vrot.lane.b32.xlu2 %v599_v0, %s530_s1  ;;  %s532_s27 = smov 113   ;;  %s533_s28 = smov 114  }
   0x8   :  { %s534_s0 = smov 101   ;;  %s535_s29 = smov 115  }
   0x9   :  { %s536_s30 = smov 102   ;;  %s537_s5 = smov 116  }
   0xa   :  { %s538_s6 = smov 103   ;;  %s539_s7 = smov 117  }
   0xb   :  { %s540_s8 = smov 104   ;;  %s541_s9 = smov 90  }
   0xc   :  { %s542_s10 = smov 118   ;;  %s543_s11 = smov 105  }
   0xd   :  { %s544_s12 = smov 91   ;;  %s545_s13 = smov 119  }
   0xe   :  { %153 = vrot.lane.b32.xlu0 %v599_v0, %s531_s26  ;;  %93 = vrot.lane.b32.xlu1 %v599_v0, %s532_s27  ;;  %s546_s14 = smov 106   ;;  %s547_s15 = smov 92  }
   0xf   :  { %89 = vrot.lane.b32.xlu2 %v599_v0, %s533_s28  ;;  %s548_s16 = smov 120   ;;  %s549_s17 = smov 107  }
  0x10   :  { %s550_s18 = smov 93   ;;  %s551_s19 = smov 121  }
  0x11   :  { %s552_s20 = smov 108   ;;  %s553_s21 = smov 94  }
  0x12   :  { %s554_s22 = smov 122   ;;  %s555_s23 = smov 109  }
  0x13   :  { %s556_s24 = smov 95   ;;  %s557_s25 = smov 123  }
  0x14   :  { %s558_s1 = smov 110   ;;  %s559_s26 = smov 96  }
  0x15   :  { %s560_s27 = smov 124   ;;  %s561_s28 = smov 111  }
  0x16   :  { %141 = vrot.lane.b32.xlu0 %v599_v0, %s534_s0  ;;  %85 = vrot.lane.b32.xlu1 %v599_v0, %s535_s29  ;;  %s562_s0 = smov 125   ;;  %s563_s29 = smov 112  }
  0x17   :  { %137 = vrot.lane.b32.xlu2 %v599_v0, %s536_s30  ;;  %s564_s30 = smov 126  }
  0x1e   :  { %81 = vrot.lane.b32.xlu0 %v599_v0, %s537_s5  ;;  %133 = vrot.lane.b32.xlu1 %v599_v0, %s538_s6  ;;  %s565_s5 = smov 127  }
  0x1f   :  { %77 = vrot.lane.b32.xlu2 %v599_v0, %s539_s7 }
  0x26   :  { %129 = vrot.lane.b32.xlu0 %v599_v0, %s540_s8  ;;  %185 = vrot.lane.b32.xlu1 %v599_v0, %s541_s9 }
  0x27   :  { %73 = vrot.lane.b32.xlu2 %v599_v0, %s542_s10 }
  0x2e   :  { %125 = vrot.lane.b32.xlu0 %v599_v0, %s543_s11  ;;  %181 = vrot.lane.b32.xlu1 %v599_v0, %s544_s12 }
  0x2f   :  { %69 = vrot.lane.b32.xlu2 %v599_v0, %s545_s13 }
  0x36   :  { %121 = vrot.lane.b32.xlu0 %v599_v0, %s546_s14  ;;  %177 = vrot.lane.b32.xlu1 %v599_v0, %s547_s15 }
  0x37   :  { %65 = vrot.lane.b32.xlu2 %v599_v0, %s548_s16 }
  0x3e   :  { %117 = vrot.lane.b32.xlu0 %v599_v0, %s549_s17  ;;  %173 = vrot.lane.b32.xlu1 %v599_v0, %s550_s18 }
  0x3f   :  { %61 = vrot.lane.b32.xlu2 %v599_v0, %s551_s19 }
  0x46   :  { %113 = vrot.lane.b32.xlu0 %v599_v0, %s552_s20  ;;  %169 = vrot.lane.b32.xlu1 %v599_v0, %s553_s21 }
  0x47   :  { %57 = vrot.lane.b32.xlu2 %v599_v0, %s554_s22 }
  0x4e   :  { %109 = vrot.lane.b32.xlu0 %v599_v0, %s555_s23  ;;  %165 = vrot.lane.b32.xlu1 %v599_v0, %s556_s24 }
  0x4f   :  { %53 = vrot.lane.b32.xlu2 %v599_v0, %s557_s25 }
  0x56   :  { %105 = vrot.lane.b32.xlu0 %v599_v0, %s558_s1  ;;  %161 = vrot.lane.b32.xlu1 %v599_v0, %s559_s26 }
  0x57   :  { %49 = vrot.lane.b32.xlu2 %v599_v0, %s560_s27 }
  0x5e   :  { %101 = vrot.lane.b32.xlu0 %v599_v0, %s561_s28  ;;  %45 = vrot.lane.b32.xlu1 %v599_v0, %s562_s0 }
  0x5f   :  { %97 = vrot.lane.b32.xlu2 %v599_v0, %s563_s29 }
  0x61   :  { %v146_v1 = vpop.permute.xlu2 %145 }
  0x62   :  { %148 = vst.msk [vmem:[#allocation2 + $0xe0] sm:$0xff] %vm34_vm0, %v146_v1 }
  0x66   :  { %41 = vrot.lane.b32.xlu0 %v599_v0, %s564_s30  ;;  %37 = vrot.lane.b32.xlu1 %v599_v0, %s565_s5 }
  0x69   :  { %v90_v2 = vpop.permute.xlu2 %89  ;;  %v226_v18 = vld [vmem:[#allocation2 + $0xe0] sm:$0xff] }
  0x6a   :  { %92 = vst.msk [vmem:[#allocation2 + $0x70] sm:$0xff] %vm34_vm0, %v90_v2  ;;  %v368_v2 = vld [vmem:[%s747_s3 + $0x10] sm:$0xff] }
  0x71   :  { %v138_v3 = vpop.permute.xlu2 %137  ;;  %v212_v15 = vld [vmem:[#allocation2 + $0x70] sm:$0xff] }
  0x72   :  { %140 = vst.msk [vmem:[#allocation2 + $0xd0] sm:$0xff] %vm34_vm0, %v138_v3  ;;  %v367_v3 = vld [vmem:[%s747_s3 + $0x8] sm:$0xff] }
  0x78   :  { %v158_v4 = vpop.permute.xlu0 %157  ;;  %v150_v5 = vpop.permute.xlu1 %149 }
  0x79   :  { %160 = vst.msk [vmem:[#allocation2 + $0xf8] sm:$0xff] %vm34_vm0, %v158_v4  ;;  %v78_v6 = vpop.permute.xlu2 %77  ;;  %v224_v22 = vld [vmem:[#allocation2 + $0xd0] sm:$0xff]  ;;  %v566_v4 = vmov 0  }
  0x7a   :  { %152 = vst.msk [vmem:[#allocation2 + $0xe8] sm:$0xff] %vm34_vm0, %v150_v5  ;;  %498 = vset.pattern.permute.xlu1 %v566_v4  ;;  %497 = vset.pattern.permute.xlu0 %v566_v4  ;;  %v366_v5 = vld [vmem:[%s747_s3] sm:$0xff] }
  0x7b   :  { %80 = vst.msk [vmem:[#allocation2 + $0x58] sm:$0xff] %vm34_vm0, %v78_v6  ;;  %382 = vperm.xlu1 %498, %v368_v2   ;;  %377 = vperm.xlu0 %497, %v367_v3  }
  0x7c   :  { %496 = vset.pattern.permute.xlu2 %v566_v4 }
  0x7d   :  { %372 = vperm.xlu2 %496, %v366_v5  }
  0x80   :  { %v154_v7 = vpop.permute.xlu0 %153  ;;  %v229_v8 = vld [vmem:[#allocation2 + $0xf8] sm:$0xff]  ;;  %v94_v9 = vpop.permute.xlu1 %93 }
  0x81   :  { %156 = vst.msk [vmem:[#allocation2 + $0xf0] sm:$0xff] %vm34_vm0, %v154_v7  ;;  %273 = vmatpush.msra.mxu1 %v229_v8  ;;  %v74_v10 = vpop.permute.xlu2 %73  ;;  %v227_v17 = vld [vmem:[#allocation2 + $0xe8] sm:$0xff] }
  0x82   :  { %96 = vst.msk [vmem:[#allocation2 + $0x78] sm:$0xff] %vm34_vm0, %v94_v9  ;;  %v209_v28 = vld [vmem:[#allocation2 + $0x58] sm:$0xff]  ;;  %v191_v9 = vld [vmem:[#allocation3 + $0x10] sm:$0xff] }
  0x83   :  { %76 = vst.msk [vmem:[#allocation2 + $0x50] sm:$0xff] %vm34_vm0, %v74_v10 }
  0x88   :  { %v142_v11 = vpop.permute.xlu0 %141  ;;  %v228_v12 = vld [vmem:[#allocation2 + $0xf0] sm:$0xff]  ;;  %v86_v13 = vpop.permute.xlu1 %85 }
  0x89   :  { %144 = vst.msk [vmem:[#allocation2 + $0xd8] sm:$0xff] %vm34_vm0, %v142_v11  ;;  %274 = vmatpush.msra.mxu1 %v228_v12  ;;  %v213_v14 = vld [vmem:[#allocation2 + $0x78] sm:$0xff]  ;;  %v70_v16 = vpop.permute.xlu2 %69  ;;  %v325_v11 = vlaneseq }
  0x8a   :  { %88 = vst.msk [vmem:[#allocation2 + $0x68] sm:$0xff] %vm34_vm0, %v86_v13  ;;  %247 = vmatpush.msra.mxu0 %v213_v14  ;;  %437 = vmatpush.msra.mxu3 %v213_v14  ;;  %v208_v31 = vld [vmem:[#allocation2 + $0x50] sm:$0xff] }
  0x8b   :  { %275 = vmatpush.msra.mxu1 %v227_v17  ;;  %72 = vst.msk [vmem:[#allocation2 + $0x48] sm:$0xff] %vm34_vm0, %v70_v16  ;;  %v326_v12 = vand.u32 127, %v325_v11  ;;  %v194_v17 = vld [vmem:[#allocation3 + $0x28] sm:$0xff] }
  0x8c   :  { %248 = vmatpush.msra.mxu0 %v212_v15  ;;  %438 = vmatpush.msra.mxu3 %v212_v15 }
  0x8d   :  { %276 = vmatpush.msra.mxu1 %v226_v18  ;;  %vm327_vm2 = vcmp.eq.s32.totalorder %v326_v12, 0  ;;  %vm329_vm3 = vcmp.eq.s32.totalorder %v326_v12, 54  ;;  %vm328_vm5 = vcmp.eq.s32.totalorder %v326_v12, 15  ;;  %vm331_vm6 = vcmp.eq.s32.totalorder %v326_v12, 69 }
  0x8e   :  { %vm330_vm4 = vmor %vm327_vm2, %vm329_vm3 }
  0x8f   :  { %vm700_vm7 = vmor %vm328_vm5, %vm331_vm6 }
  0x90   :  { %v82_v19 = vpop.permute.xlu0 %81  ;;  %v225_v20 = vld [vmem:[#allocation2 + $0xd8] sm:$0xff]  ;;  %v134_v21 = vpop.permute.xlu1 %133 }
  0x91   :  { %84 = vst.msk [vmem:[#allocation2 + $0x60] sm:$0xff] %vm34_vm0, %v82_v19  ;;  %277 = vmatpush.msra.mxu1 %v225_v20  ;;  %v211_v23 = vld [vmem:[#allocation2 + $0x68] sm:$0xff]  ;;  %v66_v24 = vpop.permute.xlu2 %65  ;;  %v190_v19 = vld [vmem:[#allocation3 + $0x8] sm:$0xff]  ;;  %v369_v20 = vld [vmem:[%s747_s3 + $0x18] sm:$0xff] }
  0x92   :  { %136 = vst.msk [vmem:[#allocation2 + $0xc8] sm:$0xff] %vm34_vm0, %v134_v21  ;;  %249 = vmatpush.msra.mxu0 %v211_v23  ;;  %439 = vmatpush.msra.mxu3 %v211_v23  ;;  %v207_v32 = vld [vmem:[#allocation2 + $0x48] sm:$0xff] }
  0x93   :  { %278 = vmatpush.msra.mxu1 %v224_v22  ;;  %68 = vst.msk [vmem:[#allocation2 + $0x40] sm:$0xff] %vm34_vm0, %v66_v24  ;;  %397 = vperm.xlu2 %496, %v369_v20  }
  0x98   :  { %v130_v25 = vpop.permute.xlu0 %129  ;;  %v210_v26 = vld [vmem:[#allocation2 + $0x60] sm:$0xff]  ;;  %v186_v27 = vpop.permute.xlu1 %185 }
  0x99   :  { %132 = vst.msk [vmem:[#allocation2 + $0xc0] sm:$0xff] %vm34_vm0, %v130_v25  ;;  %250 = vmatpush.msra.mxu0 %v210_v26  ;;  %440 = vmatpush.msra.mxu3 %v210_v26  ;;  %v223_v29 = vld [vmem:[#allocation2 + $0xc8] sm:$0xff]  ;;  %v62_v30 = vpop.permute.xlu2 %61  ;;  %v193_v26 = vld [vmem:[#allocation3 + $0x20] sm:$0xff] }
  0x9a   :  { %188 = vst.msk [vmem:[#allocation2 + $0x130] sm:$0xff] %vm34_vm0, %v186_v27  ;;  %279 = vmatpush.msra.mxu1 %v223_v29  ;;  %v206_v33 = vld [vmem:[#allocation2 + $0x40] sm:$0xff]  ;;  %v197_v27 = vld [vmem:[#allocation3 + $0x40] sm:$0xff] }
  0x9b   :  { %251 = vmatpush.msra.mxu0 %v209_v28  ;;  %441 = vmatpush.msra.mxu3 %v209_v28  ;;  %64 = vst.msk [vmem:[#allocation2 + $0x38] sm:$0xff] %vm34_vm0, %v62_v30  ;;  %v198_v28 = vld [vmem:[#allocation2] sm:$0xff]  ;;  %v189_v29 = vld [vmem:[#allocation3] sm:$0xff]  ;;  %v195_v30 = vld [vmem:[#allocation3 + $0x30] sm:$0xff] }
  0x9d   :  { %252 = vmatpush.msra.mxu0 %v208_v31  ;;  %442 = vmatpush.msra.mxu3 %v208_v31 }
  0x9f   :  { %253 = vmatpush.msra.mxu0 %v207_v32  ;;  %443 = vmatpush.msra.mxu3 %v207_v32 }
  0xa0   :  { %v126_v34 = vpop.permute.xlu0 %125  ;;  %v222_v35 = vld [vmem:[#allocation2 + $0xc0] sm:$0xff]  ;;  %v182_v36 = vpop.permute.xlu1 %181 }
  0xa1   :  { %128 = vst.msk [vmem:[#allocation2 + $0xb8] sm:$0xff] %vm34_vm0, %v126_v34  ;;  %280 = vmatpush.msra.mxu1 %v222_v35  ;;  %v236_v37 = vld [vmem:[#allocation2 + $0x130] sm:$0xff]  ;;  %254 = vmatpush.msra.mxu0 %v206_v33  ;;  %v58_v38 = vpop.permute.xlu2 %57  ;;  %v341_v35 = vld [vmem:[%s746_s2] sm:$0xff]  ;;  %s567_s2 = smov 74  }
  0xa2   :  { %184 = vst.msk [vmem:[#allocation2 + $0x128] sm:$0xff] %vm34_vm0, %v182_v36  ;;  %308 = vmatpush.msra.mxu2 %v236_v37  ;;  %444 = vmatpush.msra.mxu3 %v206_v33  ;;  %v205_v39 = vld [vmem:[#allocation2 + $0x38] sm:$0xff]  ;;  %v196_v33 = vld [vmem:[#allocation3 + $0x38] sm:$0xff] }
  0xa3   :  { %60 = vst.msk [vmem:[#allocation2 + $0x30] sm:$0xff] %vm34_vm0, %v58_v38  ;;  %255 = vmatpush.msra.mxu0 %v205_v39  ;;  %v192_v34 = vld [vmem:[#allocation3 + $0x18] sm:$0xff] }
  0xa4   :  { %445 = vmatpush.msra.mxu3 %v205_v39 }
  0xa8   :  { %v122_v40 = vpop.permute.xlu0 %121  ;;  %v221_v41 = vld [vmem:[#allocation2 + $0xb8] sm:$0xff]  ;;  %v178_v42 = vpop.permute.xlu1 %177 }
  0xa9   :  { %124 = vst.msk [vmem:[#allocation2 + $0xb0] sm:$0xff] %vm34_vm0, %v122_v40  ;;  %281 = vmatpush.msra.mxu1 %v221_v41  ;;  %v235_v43 = vld [vmem:[#allocation2 + $0x128] sm:$0xff]  ;;  %v54_v44 = vpop.permute.xlu2 %53 }
  0xaa   :  { %180 = vst.msk [vmem:[#allocation2 + $0x120] sm:$0xff] %vm34_vm0, %v178_v42  ;;  %309 = vmatpush.msra.mxu2 %v235_v43  ;;  %v204_v45 = vld [vmem:[#allocation2 + $0x30] sm:$0xff] }
  0xab   :  { %56 = vst.msk [vmem:[#allocation2 + $0x28] sm:$0xff] %vm34_vm0, %v54_v44  ;;  %256 = vmatpush.msra.mxu0 %v204_v45  ;;  %446 = vmatpush.msra.mxu3 %v204_v45 }
  0xb0   :  { %v118_v46 = vpop.permute.xlu0 %117  ;;  %v220_v47 = vld [vmem:[#allocation2 + $0xb0] sm:$0xff]  ;;  %v174_v48 = vpop.permute.xlu1 %173 }
  0xb1   :  { %120 = vst.msk [vmem:[#allocation2 + $0xa8] sm:$0xff] %vm34_vm0, %v118_v46  ;;  %282 = vmatpush.msra.mxu1 %v220_v47  ;;  %v234_v49 = vld [vmem:[#allocation2 + $0x120] sm:$0xff]  ;;  %v50_v50 = vpop.permute.xlu2 %49 }
  0xb2   :  { %176 = vst.msk [vmem:[#allocation2 + $0x118] sm:$0xff] %vm34_vm0, %v174_v48  ;;  %310 = vmatpush.msra.mxu2 %v234_v49  ;;  %v203_v51 = vld [vmem:[#allocation2 + $0x28] sm:$0xff] }
  0xb3   :  { %52 = vst.msk [vmem:[#allocation2 + $0x20] sm:$0xff] %vm34_vm0, %v50_v50  ;;  %257 = vmatpush.msra.mxu0 %v203_v51  ;;  %447 = vmatpush.msra.mxu3 %v203_v51 }
  0xb8   :  { %v668_v52 = vpop.permute.xlu0 %113  ;;  %v219_v53 = vld [vmem:[#allocation2 + $0xa8] sm:$0xff]  ;;  %v170_v54 = vpop.permute.xlu1 %169 }
  0xb9   :  { %116 = vst.msk [vmem:[#allocation2 + $0xa0] sm:$0xff] %vm34_vm0, %v668_v52  ;;  %283 = vmatpush.msra.mxu1 %v219_v53  ;;  %v233_v55 = vld [vmem:[#allocation2 + $0x118] sm:$0xff]  ;;  %v98_v56 = vpop.permute.xlu2 %97  ;;  %v338_v31 = vsel %vm700_vm7, -inf, %v668_v52 }
  0xba   :  { %172 = vst.msk [vmem:[#allocation2 + $0x110] sm:$0xff] %vm34_vm0, %v170_v54  ;;  %311 = vmatpush.msra.mxu2 %v233_v55  ;;  %v202_v57 = vld [vmem:[#allocation2 + $0x20] sm:$0xff] }
  0xbb   :  { %100 = vst.msk [vmem:[#allocation2 + $0x80] sm:$0xff] %vm34_vm0, %v98_v56  ;;  %258 = vmatpush.msra.mxu0 %v202_v57  ;;  %448 = vmatpush.msra.mxu3 %v202_v57 }
  0xc0   :  { %v674_v58 = vpop.permute.xlu0 %109  ;;  %v218_v59 = vld [vmem:[#allocation2 + $0xa0] sm:$0xff]  ;;  %v166_v60 = vpop.permute.xlu1 %165 }
  0xc1   :  { %112 = vst.msk [vmem:[#allocation2 + $0x98] sm:$0xff] %vm34_vm0, %v674_v58  ;;  %284 = vmatpush.msra.mxu1 %v218_v59  ;;  %v232_v61 = vld [vmem:[#allocation2 + $0x110] sm:$0xff] }
  0xc2   :  { %168 = vst.msk [vmem:[#allocation2 + $0x108] sm:$0xff] %vm34_vm0, %v166_v60  ;;  %312 = vmatpush.msra.mxu2 %v232_v61  ;;  %v214_v16 = vld [vmem:[#allocation2 + $0x80] sm:$0xff] }
  0xc8   :  { %v106_v62 = vpop.permute.xlu0 %105  ;;  %v217_v63 = vld [vmem:[#allocation2 + $0x98] sm:$0xff]  ;;  %v162_v0 = vpop.permute.xlu1 %161 }
  0xc9   :  { %108 = vst.msk [vmem:[#allocation2 + $0x90] sm:$0xff] %vm34_vm0, %v106_v62  ;;  %285 = vmatpush.msra.mxu1 %v217_v63  ;;  %v231_v1 = vld [vmem:[#allocation2 + $0x108] sm:$0xff]  ;;  %v335_v21 = vsel %vm330_vm4, -inf, %v106_v62 }
  0xca   :  { %164 = vst.msk [vmem:[#allocation2 + $0x100] sm:$0xff] %vm34_vm0, %v162_v0  ;;  %313 = vmatpush.msra.mxu2 %v231_v1  ;;  %v339_v24 = vmax.f32 %v335_v21, %v674_v58 }
  0xcc   :  { %v340_v32 = vmax.f32 %v339_v24, %v338_v31 }
  0xd0   :  { %v102_v6 = vpop.permute.xlu0 %101  ;;  %v216_v7 = vld [vmem:[#allocation2 + $0x90] sm:$0xff]  ;;  %v46_v8 = vpop.permute.xlu1 %45 }
  0xd1   :  { %104 = vst.msk [vmem:[#allocation2 + $0x88] sm:$0xff] %vm34_vm0, %v102_v6  ;;  %286 = vmatpush.msra.mxu1 %v216_v7  ;;  %v230_v10 = vld [vmem:[#allocation2 + $0x100] sm:$0xff] }
  0xd2   :  { %48 = vst.msk [vmem:[#allocation2 + $0x18] sm:$0xff] %vm34_vm0, %v46_v8  ;;  %314 = vmatpush.msra.mxu2 %v230_v10 }
  0xd3   :  { %429 = vmatmul.msk.f32.vlgmr.msra.gmra.mxu2 %vm237_vm1, %v191_v9 }
  0xd7   :  { %v373_v43 = vpop.permute.xlu2 %372 }
  0xd8   :  { %v42_v13 = vpop.permute.xlu0 %41  ;;  %v215_v14 = vld [vmem:[#allocation2 + $0x88] sm:$0xff]  ;;  %v38_v15 = vpop.permute.xlu1 %37 }
  0xd9   :  { %44 = vst.msk [vmem:[#allocation2 + $0x10] sm:$0xff] %vm34_vm0, %v42_v13  ;;  %287 = vmatpush.msra.mxu1 %v215_v14  ;;  %v201_v18 = vld [vmem:[#allocation2 + $0x18] sm:$0xff] }
  0xda   :  { %40 = vst.msk [vmem:[#allocation2 + $0x8] sm:$0xff] %vm34_vm0, %v38_v15  ;;  %259 = vmatpush.msra.mxu0 %v201_v18  ;;  %449 = vmatpush.msra.mxu3 %v201_v18 }
  0xdb   :  { %288 = vmatpush.msra.mxu1 %v214_v16  ;;  %430 = vmatmul.msk.f32.gmra.mxu2 %vm237_vm1, %v194_v17 }
  0xdc   :  { %289 = vmatmul.f32.vlgmr.msra.gmra.mxu1 %v190_v19 }
  0xe0   :  { %v200_v23 = vld [vmem:[#allocation2 + $0x10] sm:$0xff] }
  0xe1   :  { %260 = vmatpush.msra.mxu0 %v200_v23  ;;  %450 = vmatpush.msra.mxu3 %v200_v23  ;;  %v199_v25 = vld [vmem:[#allocation2 + $0x8] sm:$0xff] }
  0xe3   :  { %261 = vmatpush.msra.mxu0 %v199_v25  ;;  %451 = vmatpush.msra.mxu3 %v199_v25 }
  0xe4   :  { %292 = vmatmul.f32.gmra.mxu1 %v193_v26  ;;  %431 = vmatmul.msk.f32.gmra.mxu2 %vm237_vm1, %v197_v27 }
  0xe5   :  { %262 = vmatpush.msra.mxu0 %v198_v28  ;;  %452 = vmatpush.msra.mxu3 %v198_v28 }
  0xe6   :  { %263 = vmatmul.f32.vlgmr.msra.gmra.mxu0 %v189_v29  ;;  %269 = vmatmul.f32.vlgmr.msra.gmra.mxu3 %v195_v30 }
  0xe7   :  { %361 = vmatpush.msrb.mxu3 %v340_v32 }
  0xec   :  { %295 = vmatmul.f32.gmra.mxu1 %v196_v33 }
  0xed   :  { %v383_v51 = vpop.permute.xlu1 %382  ;;  %v378_v54 = vpop.permute.xlu0 %377 }
  0xee   :  { %266 = vmatmul.f32.gmra.mxu0 %v192_v34  ;;  %432 = vmatmul.msk.f32.vlgmr.msrb.gmra.mxu3 %vm342_vm8, %v341_v35  ;;  %v398_v59 = vpop.permute.xlu2 %397 }
 0x156   :  { %v316_v36 = vpop.f32.mrf.mxu2 }
 0x159   :  { %v290_v37 = vpop.f32.mrf.mxu1 }
 0x15e   :  { %v319_v38 = vpop.f32.mrf.mxu2 }
 0x161   :  { %v293_v39 = vpop.f32.mrf.mxu1 }
 0x163   :  { %v264_v40 = vpop.f32.mrf.mxu0 }
 0x164   :  { %v291_v41 = vadd.f32 %v290_v37, %v264_v40 }
 0x166   :  { %v317_v42 = vadd.f32 %v316_v36, %v291_v41 }
 0x167   :  { %v322_v44 = vpop.f32.mrf.mxu2 }
 0x168   :  { %v385_v45 = vadd.f32 %v373_v43, %v317_v42 }
 0x169   :  { %v270_v46 = vpop.f32.mrf.mxu3  ;;  %v296_v47 = vpop.f32.mrf.mxu1 }
 0x16a   :  { %v297_v48 = vadd.f32 %v296_v47, %v270_v46  ;;  %v388_v49 = vmax.f32 %v385_v45, 0.0 }
 0x16b   :  { %v267_v50 = vpop.f32.mrf.mxu0 }
 0x16c   :  { %v294_v52 = vadd.f32 %v293_v39, %v267_v50  ;;  %v323_v53 = vadd.f32 %v322_v44, %v297_v48  ;;  %406 = vrot.lane.b32.xlu1 %v388_v49, %s567_s2  ;;  %392 = vst.msk [vmem:[%s748_s4] sm:$0xff] %vm391_vm9, %v388_v49 }
 0x16e   :  { %v387_v55 = vadd.f32 %v383_v51, %v323_v53  ;;  %v320_v56 = vadd.f32 %v319_v38, %v294_v52 }
 0x170   :  { %v390_v57 = vmax.f32 %v387_v55, 0.0  ;;  %v386_v58 = vadd.f32 %v378_v54, %v320_v56 }
 0x171   :  { %v363_v60 = vpop.f32.mrf.mxu3 }
 0x172   :  { %394 = vst.msk [vmem:[%s748_s4 + $0x10] sm:$0xff] %vm391_vm9, %v390_v57  ;;  %v389_v61 = vmax.f32 %v386_v58, 0.0  ;;  %v400_v62 = vadd.f32 %v398_v59, %v363_v60  ;;  %410 = vrot.lane.b32.xlu0 %v390_v57, %s567_s2 }
 0x174   :  { %393 = vst.msk [vmem:[%s748_s4 + $0x8] sm:$0xff] %vm391_vm9, %v389_v61  ;;  %v401_v63 = vmax.f32 %v400_v62, 0.0  ;;  %408 = vrot.lane.b32.xlu2 %v389_v61, %s567_s2 }
 0x176   :  { %402 = vst.msk [vmem:[%s748_s4 + $0x18] sm:$0xff] %vm391_vm9, %v401_v63  ;;  %420 = vrot.lane.b32.xlu1 %v401_v63, %s567_s2 }
 0x1ce   :  { %v409_v0 = vpop.permute.xlu2 %408 }
 0x1cf   :  { %434 = vst.msk [vmem:[%s748_s4 + $0x28] sm:$0xff] %vm391_vm9, %v409_v0 }
 0x1de   :  { %v407_v1 = vpop.permute.xlu1 %406 }
 0x1df   :  { %433 = vst.msk [vmem:[%s748_s4 + $0x20] sm:$0xff] %vm391_vm9, %v407_v1 }
 0x1e4   :  { %v411_v2 = vpop.permute.xlu0 %410 }
 0x1e5   :  { %435 = vst.msk [vmem:[%s748_s4 + $0x30] sm:$0xff] %vm391_vm9, %v411_v2 }
 0x1e8   :  { %v421_v3 = vpop.permute.xlu1 %420 }
 0x1e9   :  { %436 = vst.msk [vmem:[%s748_s4 + $0x38] sm:$0xff] %vm391_vm9, %v421_v3 }
 0x1ea   :  { %428 = vsyncpa [#allocation4], 1 }

</bundles_post_ra>
